<compile_context>
chip_gen: v7x
topology: tpu7x:2x2x1
jax: 0.10.0
libtpu: 0.0.40
codegen_flags: <defaults>
</compile_context>

<pallas_src>
import functools

import jax
import jax.numpy as jnp
from jax.experimental import pallas as pl
from jax.experimental.pallas import tpu as pltpu


def _round_up(x, m):
    return ((x + m - 1) // m) * m


def _min_sublane(itemsize):
    # Minimum second-minor tile per packed dtype: f32 -> 8, bf16 -> 16, int8/fp8 -> 32.
    return {4: 8, 2: 16, 1: 32}.get(itemsize, 8)


def _vmem_capacity_bytes():
    """Per-TensorCore VMEM capacity, queried from the chip (conservative fallback)."""
    try:
        info = pltpu.get_tpu_info()
        cap = int(getattr(info, "vmem_capacity_bytes", 0))
        if cap > 0:
            return cap
    except Exception:
        pass
    return 64 * 1024 * 1024  # v7x-sized fallback: safe on every generation


def _res_linear_kernel(x_ref, w_ref, b_ref, o_ref, *, tn):
    """Fused residual + linear for one (tm, tn) output tile.

    x_ref: (tm, D)  activation rows, full contraction dim (original dtype);
                    also the source of the residual slice (no second stream).
    w_ref: (D, tn)  bf16 weight column tile
    b_ref: (1, tn)  f32 bias tile
    o_ref: (tm, tn) output tile
    """
    j = pl.program_id(1)
    xk = x_ref[...]
    y = jnp.dot(xk.astype(w_ref.dtype), w_ref[...],            # bf16 MXU, f32 accum
                preferred_element_type=jnp.float32)
    y = y + b_ref[...].astype(jnp.float32)

    # Residual: slice this tile's columns out of the resident slab (VMEM read only).
    start = j * tn
    if tn % 128 == 0:
        start = pl.multiple_of(start, 128)
    xr = x_ref[:, pl.ds(start, tn)]
    o_ref[...] = (xr.astype(jnp.float32) + y).astype(o_ref.dtype)


def _pick_tiles(M, D, x_itemsize, o_itemsize, budget_bytes, min_tm):
    """Pick (tm, tn): largest aligned tiles under the VMEM budget.

    Policy: prefer tn in {512, 256}; shrink tm before letting tn fall to 128
    (128 half-fills the 256-wide MXU on v6e/v7x).
    """
    tn = D
    for cand in (512, 256, 128):
        if D % cand == 0:
            tn = cand
            break

    tm = min(512, _round_up(M, min_tm))

    def vmem_est(tm_, tn_):
        return (2 * tm_ * D * x_itemsize        # x slab (contraction + residual source)
                + 2 * D * tn_ * 2               # bf16 weight tile (double buffered)
                + 2 * 8 * max(tn_, 128) * 4     # bias tile (sublane/lane padded)
                + 2 * tm_ * tn_ * o_itemsize)   # output tile

    # Shrink tm first ...
    while vmem_est(tm, tn) > budget_bytes and tm > min_tm:
        tm = _round_up(max(min_tm, tm // 2), min_tm)
    # ... and only drop tn (possibly to 128) as a last resort.
    while vmem_est(tm, tn) > budget_bytes and tn > 128 and D % (tn // 2) == 0:
        tn //= 2

    # Megacore: if there is only one row tile, keep >= 2 column tiles so both
    # TensorCores (v7x) have work.
    if _round_up(M, min_tm) <= tm and D // tn < 2 and tn >= 256 and D % (tn // 2) == 0:
        tn //= 2

    return tm, tn


def res_conn_linear(x, w, b, *, tm=None, tn=None, vmem_budget_bytes=None):
    """ResConn(fn=Linear(D, D)) forward:  out = x + (x @ W + b).

    x: (M, D) activations, w: (D, D) weights (ideally pre-cast to bf16), b: (D,) bias.
    """
    M, D = x.shape
    assert w.shape == (D, D) and b.shape == (D,)

    xsize = x.dtype.itemsize
    osize = xsize
    min_tm = _min_sublane(xsize)

    vmem_cap = _vmem_capacity_bytes()
    if vmem_budget_bytes is None:
        vmem_budget_bytes = int(0.45 * vmem_cap)

    auto_tm, auto_tn = _pick_tiles(M, D, xsize, osize, vmem_budget_bytes, min_tm)
    tm = auto_tm if tm is None else tm
    tn = auto_tn if tn is None else tn

    # Pad rows only to the sublane multiple; Pallas masks the partial edge row-block.
    Mp = _round_up(M, min_tm)
    tm = min(tm, Mp)
    assert (tm % min_tm == 0) or (tm == Mp)
    assert (D % tn == 0) or (tn == D)

    if Mp != M:
        x_in = jnp.zeros((Mp, D), dtype=x.dtype).at[:M].set(x)
    else:
        x_in = x

    # Weight cast should be hoisted by the caller (done once at init); guard anyway.
    wb = w if w.dtype == jnp.bfloat16 else w.astype(jnp.bfloat16)
    b2 = b.astype(jnp.float32).reshape(1, D)

    n_i = pl.cdiv(Mp, tm)
    n_j = pl.cdiv(D, tn)
    wsize = wb.dtype.itemsize

    cost = pl.CostEstimate(
        flops=2 * Mp * D * D + 2 * Mp * D,
        transcendentals=0,
        bytes_accessed=int(Mp * D * xsize          # x slab, read once per row tile
                           + D * D * wsize * n_i   # weight streamed once per row tile
                           + D * 4 * n_i           # bias
                           + Mp * D * osize),      # output
    )

    vmem_need = (2 * tm * D * xsize + 2 * D * tn * wsize
                 + 2 * 8 * max(tn, 128) * 4 + 2 * tm * tn * osize)
    vmem_limit = min(max(32 * 1024 * 1024, int(vmem_need * 1.5) + (4 << 20)),
                     vmem_cap - (8 << 20))

    kernel = functools.partial(_res_linear_kernel, tn=tn)
    out = pl.pallas_call(
        kernel,
        out_shape=jax.ShapeDtypeStruct((Mp, D), x.dtype),
        grid_spec=pltpu.PrefetchScalarGridSpec(
            num_scalar_prefetch=0,
            grid=(n_i, n_j),
            in_specs=[
                pl.BlockSpec((tm, D), lambda i, j: (i, 0)),   # x rows, full K (resident over j)
                pl.BlockSpec((D, tn), lambda i, j: (0, j)),   # bf16 weight column tile
                pl.BlockSpec((1, tn), lambda i, j: (0, j)),   # bias tile
            ],
            out_specs=pl.BlockSpec((tm, tn), lambda i, j: (i, j)),
        ),
        compiler_params=pltpu.CompilerParams(
            dimension_semantics=("parallel", "parallel"),
            vmem_limit_bytes=int(vmem_limit),
        ),
        cost_estimate=cost,
    )(x_in, wb, b2)

    return out[:M] if Mp != M else out


class ResConn:
    """JAX mirror of the PyTorch ResConn: out = x + fn(x)."""

    def __init__(self, fn):
        self.fn = fn

    def __call__(self, x, **kwargs):
        # `fn` here is the fused kernel: it already performs x + fn(x) on-chip.
        return self.fn(x, **kwargs)


if __name__ == "__main__":
    # Small transformer-ish shapes: batch=2, seq=8, hidden=128 (lane-aligned).
    B, S, D = 2, 8, 128
    key = jax.random.PRNGKey(0)
    kx, kw, kb = jax.random.split(key, 3)

    x_bsd = jax.random.normal(kx, (B, S, D), dtype=jnp.float32)
    w = jax.random.normal(kw, (D, D), dtype=jnp.float32) * 0.02
    b = jax.random.normal(kb, (D,), dtype=jnp.float32) * 0.02

    # Weight cast hoisted out of the hot path: done exactly once at "init".
    w_bf16 = w.astype(jnp.bfloat16)

    # Glue: flatten (B, S, D) -> (M, D) for the kernel.
    x = x_bsd.reshape(B * S, D)

    block = ResConn(functools.partial(res_conn_linear, w=w_bf16, b=b))
    out = jax.block_until_ready(block(x))

    # Reference of the ResConn semantics (x + fn(x)) with the same bf16 MXU
    # operands the kernel uses; accumulation, bias and residual stay in f32.
    xb = x.astype(jnp.bfloat16).astype(jnp.float32)
    wbf = w_bf16.astype(jnp.float32)
    ref = x + (xb @ wbf + b)
    assert out.shape == (B * S, D)
    assert jnp.allclose(out, ref, atol=1e-3, rtol=1e-3), \
        float(jnp.max(jnp.abs(out - ref)))

    # Restore original layout (glue only).
    _ = out.reshape(B, S, D)

    print("KERNEL_OK")
</pallas_src>

<mosaic_0001>
module attributes {stable_mosaic.version = 11 : i64} {
  func.func @_res_linear_kernel(%arg0: i32, %arg1: i32, %arg2: memref<16x128xf32, #tpu.memory_space<vmem>>, %arg3: memref<128x128xbf16, #tpu.memory_space<vmem>>, %arg4: memref<1x128xf32, #tpu.memory_space<vmem>>, %arg5: memref<16x128xf32, #tpu.memory_space<vmem>>) attributes {dimension_semantics = [#tpu.dimension_semantics<parallel>, #tpu.dimension_semantics<parallel>], iteration_bounds = array<i64: 1, 1>, scalar_prefetch = 0 : i64, scratch_operands = 0 : i64, tpu.core_type = #tpu.core_type<tc>, window_params = [{transform_indices = @transform_0, window_bounds = array<i64: 16, 128>}, {transform_indices = @transform_1, window_bounds = array<i64: 128, 128>}, {transform_indices = @transform_2, window_bounds = array<i64: 1, 128>}, {transform_indices = @transform_3, window_bounds = array<i64: 16, 128>}]} {
    %c0 = arith.constant 0 : index
    %c0_0 = arith.constant 0 : index
    %0 = vector.load %arg2[%c0, %c0_0] : memref<16x128xf32, #tpu.memory_space<vmem>>, vector<16x128xf32>
    %1 = arith.truncf %0 : vector<16x128xf32> to vector<16x128xbf16>
    %c0_1 = arith.constant 0 : index
    %c0_2 = arith.constant 0 : index
    %2 = vector.load %arg3[%c0_1, %c0_2] : memref<128x128xbf16, #tpu.memory_space<vmem>>, vector<128x128xbf16>
    %cst = arith.constant dense<0.000000e+00> : vector<16x128xf32>
    %3 = tpu.matmul %1, %2, %cst {dimension_numbers = #tpu.dot_dimension_numbers<[1], [0], [0], [1], [0, 0, 1, 1], [], []>} : vector<16x128xbf16>, vector<128x128xbf16>, vector<16x128xf32> -> vector<16x128xf32>
    %c0_3 = arith.constant 0 : index
    %c0_4 = arith.constant 0 : index
    %4 = vector.load %arg4[%c0_3, %c0_4] : memref<1x128xf32, #tpu.memory_space<vmem>>, vector<1x128xf32>
    %5 = vector.broadcast %4 : vector<1x128xf32> to vector<16x128xf32>
    %6 = arith.addf %3, %5 : vector<16x128xf32>
    %c128_i32 = arith.constant 128 : i32
    %7 = arith.muli %arg1, %c128_i32 : i32
    %8 = tpu.assume_multiple %7, 128 : i32
    %c0_5 = arith.constant 0 : index
    %9 = arith.index_cast %8 : i32 to index
    %10 = vector.load %arg2[%c0_5, %9] : memref<16x128xf32, #tpu.memory_space<vmem>>, vector<16x128xf32>
    %11 = arith.addf %10, %6 : vector<16x128xf32>
    %c0_6 = arith.constant 0 : index
    %c0_7 = arith.constant 0 : index
    %12 = vector.load %arg5[%c0_6, %c0_7] : memref<16x128xf32, #tpu.memory_space<vmem>>, vector<16x128xf32>
    tpu.vector_store %arg5[%c0_6, %c0_7], %11 {strides = array<i32>} : memref<16x128xf32, #tpu.memory_space<vmem>>, vector<16x128xf32>,
    return
  }
  func.func @transform_0(%arg0: i32, %arg1: i32) -> (i32, i32) {
    %c0_i32 = arith.constant 0 : i32
    %c0_i32_0 = arith.constant 0 : i32
    return %arg0, %c0_i32 : i32, i32
  }
  func.func @transform_1(%arg0: i32, %arg1: i32) -> (i32, i32) {
    %c0_i32 = arith.constant 0 : i32
    %c0_i32_0 = arith.constant 0 : i32
    return %c0_i32, %arg1 : i32, i32
  }
  func.func @transform_2(%arg0: i32, %arg1: i32) -> (i32, i32) {
    %c0_i32 = arith.constant 0 : i32
    %c0_i32_0 = arith.constant 0 : i32
    return %c0_i32, %arg1 : i32, i32
  }
  func.func @transform_3(%arg0: i32, %arg1: i32) -> (i32, i32) {
    %c0_i32 = arith.constant 0 : i32
    return %arg0, %arg1 : i32, i32
  }
}

</mosaic_0001>

<bundles_post_ra>
// kernel: tpu_custom_call.1
= control target key start
LH: loop header
LB: loop body
LE: loop exit
PB: predicated region body
PF: predicated region fallthrough
CT: control target
= control target key end

     0   :  { %8 = vsyncpa [#allocation3], 0  ;;  %s389_s0 = inlined_call_operand.hbm [shape: f32[16,128], index: 0, kind: input, shape index: {}]   ;;  %s390_s1 = inlined_call_operand.hbm [shape: bf16[128,128], index: 1, kind: input, shape index: {}]   ;;  %s391_s2 = inlined_call_operand.vmem [shape: f32[1,128], index: 2, kind: input, shape index: {}]   ;;  %s392_s3 = inlined_call_operand.hbm [shape: f32[16,128], index: 3, kind: output, shape index: {}]  }
   0x1   :  { %9 = vsyncpa [#allocation6], 0 }
   0x2   :  { %10 = vsyncpa [#allocation4], 0  ;;  %s315_s12 = smov [#allocation2]   ;;  %s243_s16 = scalar_lea.hbm %s389_s0, 256 }
   0x3   :  { %s16_s13 = sshll.u32 %s315_s12, 4  ;;  %p244_p0 = scmp.ne.s32.totalorder %s389_s0, %s243_s16  ;;  %s17_s13 = int_to_ptr.vmem [resolvable:$true] %s16_s13 }
   0x4   :  { %p247_p1 = scmp.lt.u32.totalorder %s243_s16, %s389_s0 }
   0x6   :  { %p249_p2 = pnand %p247_p1, %p244_p0 }
   0x8   :  { %252 = shalt.err (!%p249_p2)
}
   0x9   :  { %s253_s21 = scalar_lea.vmem %s17_s13, 256  ;;  %p258_p4 = scmp.lt.s32.totalorder %s17_s13, %s17_s13 }
   0xa   :  { %p254_p3 = scmp.ne.s32.totalorder %s17_s13, %s253_s21  ;;  %p259_p5 = scmp.lt.s32.totalorder %s253_s21, %s253_s21 }
   0xc   :  { %p260_p6 = por %p259_p5, %p258_p4 }
   0xe   :  { %p261_p7 = pnand %p260_p6, %p254_p3 }
  0x10   :  { %264 = shalt.err (!%p261_p7)
}
  0x11   :  { %s316_s22 = smov 128   ;;  %s317_s23 = smov 8  }
  0x12   :  { %22 = dma.hbm_to_vmem [thread:$0]  %s389_s0, 256, %s17_s13, [#allocation3], %s316_s22, %s316_s22, %s317_s23  }
  0x13   :  { %s318_s26 = smov [#allocation5]   ;;  %s265_s30 = scalar_lea.hbm %s390_s1, 1024 }
  0x14   :  { %s28_s27 = sshll.u32 %s318_s26, 4  ;;  %p266_p8 = scmp.ne.s32.totalorder %s390_s1, %s265_s30  ;;  %s29_s27 = int_to_ptr.vmem [resolvable:$true] %s28_s27 }
  0x15   :  { %p269_p9 = scmp.lt.u32.totalorder %s265_s30, %s390_s1 }
  0x17   :  { %p271_p10 = pnand %p269_p9, %p266_p8 }
  0x19   :  { %274 = shalt.err (!%p271_p10)
}
  0x1a   :  { %s275_s8 = scalar_lea.vmem %s29_s27, 1024  ;;  %p280_p12 = scmp.lt.s32.totalorder %s29_s27, %s29_s27 }
  0x1b   :  { %p276_p11 = scmp.ne.s32.totalorder %s29_s27, %s275_s8  ;;  %p281_p13 = scmp.lt.s32.totalorder %s275_s8, %s275_s8 }
  0x1d   :  { %p282_p0 = por %p281_p13, %p280_p12 }
  0x1f   :  { %p283_p1 = pnand %p282_p0, %p276_p11 }
  0x21   :  { %286 = shalt.err (!%p283_p1)
}
  0x22   :  { %s319_s0 = smov 64   ;;  %s320_s9 = smov 4  }
  0x23   :  { %34 = dma.hbm_to_vmem [thread:$0]  %s390_s1, 1024, %s29_s27, [#allocation6], %s319_s0, %s319_s0, %s320_s9  }
  0x24   :  { %309 = dma.done.wait [#allocation3], 256  }
  0x25   :  { %310 = vsyncadd [#allocation3], 4294967040 }
  0x26   :  { %311 = dma.done.wait [#allocation6], 1024  }
  0x27   :  { %312 = vsyncadd [#allocation6], 4294966272  ;;  %v321_v0 = vmov 0.0   ;;  %vm322_vm0 = vmmov 0   ;;  %v235_v1 = vld [vmem:[#allocation5] sm:$0xff]   ;;  %v236_v2 = vld [vmem:[#allocation5 + $0x8] sm:$0xff]  }
  0x28   :  { %206 = vmatprep.subr.bf16.mxu0 %v321_v0  ;;  %222 = vmatprep.mubr.msk.bf16.mxu0 %vm322_vm0, %v321_v0  ;;  %v237_v3 = vld [vmem:[#allocation5 + $0x10] sm:$0xff]   ;;  %v238_v4 = vld [vmem:[#allocation5 + $0x18] sm:$0xff]   ;;  %v239_v5 = vld [vmem:[#allocation5 + $0x20] sm:$0xff]   ;;  %s323_s13 = smov [#allocation7]  }
  0x29   :  { %207 = vmatpush3.bf16.msra.mxu0 %v235_v1  ;;  %v240_v6 = vld [vmem:[#allocation5 + $0x28] sm:$0xff]   ;;  %v241_v7 = vld [vmem:[#allocation5 + $0x30] sm:$0xff]   ;;  %v242_v8 = vld [vmem:[#allocation5 + $0x38] sm:$0xff]   ;;  %s174_s14 = sshll.u32 %s323_s13, 4  ;;  %s175_s14 = int_to_ptr.vmem [resolvable:$true] %s174_s14 }
  0x2a   :  { %208 = vmatprep.subr.bf16.mxu0 %v321_v0  ;;  %v44_v9 = vld [vmem:[#allocation2] sm:$0xff]  ;;  %v45_v10 = vld [vmem:[#allocation2 + $0x8] sm:$0xff]  ;;  %s287_s15 = scalar_lea.vmem %s175_s14, 256  ;;  %p292_p3 = scmp.lt.s32.totalorder %s175_s14, %s175_s14 }
  0x2b   :  { %v46_v11 = vpack.c.bf16 %v45_v10, %v44_v9  ;;  %v188_v12 = vld [vmem:[%s391_s2] ss:$0 sm:$0xff]  ;;  %p288_p2 = scmp.ne.s32.totalorder %s175_s14, %s287_s15  ;;  %p293_p4 = scmp.lt.s32.totalorder %s287_s15, %s287_s15 }
  0x2d   :  { %209 = vmatpush3.bf16.msra.mxu0 %v236_v2  ;;  %p294_p5 = por %p293_p4, %p292_p3 }
  0x2e   :  { %210 = vmatprep.subr.bf16.mxu0 %v321_v0 }
  0x2f   :  { %p295_p6 = pnand %p294_p5, %p288_p2 }
  0x31   :  { %211 = vmatpush3.bf16.msra.mxu0 %v237_v3 }
  0x32   :  { %212 = vmatprep.subr.bf16.mxu0 %v321_v0 }
  0x35   :  { %213 = vmatpush3.bf16.msra.mxu0 %v238_v4 }
  0x36   :  { %214 = vmatprep.subr.bf16.mxu0 %v321_v0 }
  0x39   :  { %215 = vmatpush3.bf16.msra.mxu0 %v239_v5 }
  0x3a   :  { %216 = vmatprep.subr.bf16.mxu0 %v321_v0 }
  0x3d   :  { %217 = vmatpush3.bf16.msra.mxu0 %v240_v6 }
  0x3e   :  { %218 = vmatprep.subr.bf16.mxu0 %v321_v0 }
  0x41   :  { %219 = vmatpush3.bf16.msra.mxu0 %v241_v7 }
  0x42   :  { %220 = vmatprep.subr.bf16.mxu0 %v321_v0 }
  0x45   :  { %221 = vmatpush3.bf16.msra.mxu0 %v242_v8 }
  0x48   :  { %223 = vmatmul.mubr.bf16.vlgmr.msra.gmra.mrb[0].mxu0 %v46_v11 }
 0x11b   :  { %v152_v13 = vpop.f32.mrb[0].mxu0 }
 0x11c   :  { %v153_v14 = vadd.f32 %v188_v12, %v152_v13  ;;  %v224_v15 = vpop.f32.mrb[1].mxu0 }
 0x11d   :  { %v155_v16 = vpop.f32.mrb[2].mxu0 }
 0x11e   :  { %v165_v17 = vadd.f32 %v153_v14, %v44_v9  ;;  %v156_v18 = vadd.f32 %v188_v12, %v155_v16  ;;  %v225_v19 = vpop.f32.mrb[3].mxu0 }
 0x120   :  { %167 = vst [vmem:[#allocation7] sm:$0xff] %v165_v17  ;;  %v166_v20 = vadd.f32 %v156_v18, %v45_v10 }
 0x122   :  { %168 = vst [vmem:[#allocation7 + $0x8] sm:$0xff] %v166_v20 }
 0x123   :  { %298 = shalt.err (!%p295_p6)
}
 0x124   :  { %s299_s17 = scalar_lea.hbm %s392_s3, 256 }
 0x125   :  { %p300_p7 = scmp.ne.s32.totalorder %s392_s3, %s299_s17  ;;  %p303_p8 = scmp.lt.u32.totalorder %s299_s17, %s392_s3 }
 0x127   :  { %p305_p9 = pnand %p303_p8, %p300_p7 }
 0x129   :  { %308 = shalt.err (!%p305_p9)
}
 0x12a   :  { %180 = dma.vmem_to_hbm [thread:$0]  %s175_s14, 256, %s392_s3, [#allocation4], %s316_s22, %s316_s22, %s317_s23  }
 0x12b   :  { %313 = dma.done.wait [#allocation4], 256  }
 0x12c   :  { %314 = vsyncadd [#allocation4], 4294967040 }
 0x12d   :  { %184 = vsyncpa [#allocation3], 1 }
 0x12e   :  { %185 = vsyncpa [#allocation6], 1 }
 0x12f   :  { %186 = vsyncpa [#allocation4], 1 }

</bundles_post_ra>
